<compile_context>
chip_gen: v7x
topology: tpu7x:2x2x1
jax: 0.10.0
libtpu: 0.0.40
codegen_flags: <defaults>
</compile_context>

<pallas_src>
import functools

import jax
import jax.numpy as jnp
from jax.experimental import pallas as pl
from jax.experimental.pallas import tpu as pltpu


def _round_up(x: int, m: int) -> int:
    return ((x + m - 1) // m) * m


def _linear_probe_kernel(x_ref, w_ref, b_ref, o_ref):
    # x_ref: (tm, K), w_ref: (K, N), b_ref: (1, N), o_ref: (tm, N)
    acc = jnp.dot(x_ref[...], w_ref[...], preferred_element_type=jnp.float32)
    o_ref[...] = (acc + b_ref[...].astype(jnp.float32)).astype(o_ref.dtype)


@functools.partial(jax.jit, static_argnames=("tm",))
def dependency_probe_forward(embeddings, weight, bias, *, tm=4096):
    """embeddings: (B, S, D); weight: (R, D) [nn.Linear layout]; bias: (R,)."""
    B, S, D = embeddings.shape
    R = weight.shape[0]
    M = B * S
    dt = embeddings.dtype
    itemsize = jnp.dtype(dt).itemsize

    # Keep the matmul on the native MXU path for the activation dtype and halve
    # the (tiny) weight DMA when activations are bf16.
    weight = weight.astype(dt)
    bias = bias.astype(dt)

    # ---- lane-dense row packing (k token rows per 128-lane row) --------------
    k = 128 // R if (R < 128 and 128 % R == 0) else 1
    if k > 1 and M % k != 0:
        k = 1                                    # avoid an HBM-copying pad
    if k > 1 and k * k * D * R * itemsize > (4 << 20):
        k = 1                                    # block-diagonal weight too big

    if k > 1:
        Mp, Kd, Nd = M // k, k * D, k * R        # Nd == 128
        x2d = embeddings.reshape(Mp, Kd)         # free: contiguous row merge
        w_t = weight.T                           # (D, R)
        eye = jnp.eye(k, dtype=dt)
        w2d = (eye[:, None, :, None] * w_t[None, :, None, :]).reshape(Kd, Nd)
        b2d = jnp.tile(bias.reshape(1, R), (1, k))
    else:
        Mp, Kd, Nd = M, D, R
        x2d = embeddings.reshape(Mp, Kd)
        w2d = weight.T
        b2d = bias.reshape(1, R)

    # ---- row tile selection (physical VMEM accounting) -----------------------
    sub = 32 // itemsize                         # sublane pack: 8 f32, 16 bf16
    lane = 128

    def phys(rows, cols):                        # physical (padded) VMEM bytes
        return _round_up(max(rows, 1), sub) * _round_up(cols, lane) * itemsize

    def pipeline_vmem(rows):
        return (2 * phys(rows, Kd) + 2 * phys(rows, Nd)        # x / out tiles
                + 2 * (phys(Kd, Nd) + phys(1, Nd)))            # weight / bias

    tm_req = _round_up(max(tm // k, 8), 8)       # requested tile, packed rows
    if Mp <= 8:
        tm_rows = Mp                             # single full-array block
    else:
        # Keep >= 2 grid steps so v7x's two TensorCores both get work.
        tm_rows = min(tm_req, _round_up(pl.cdiv(Mp, 2), 8))
        VMEM_BUDGET = 40 << 20                   # headroom under v7x's 64 MiB
        while tm_rows > 8 and pipeline_vmem(tm_rows) > VMEM_BUDGET:
            tm_rows = max(8, _round_up(tm_rows // 2, 8))
    grid = pl.cdiv(Mp, tm_rows)

    vmem_need = pipeline_vmem(tm_rows)
    vmem_limit = int(min(max(2 * vmem_need, 8 << 20), 48 << 20))

    cost = pl.CostEstimate(
        flops=2 * grid * tm_rows * Kd * Nd,
        transcendentals=0,
        bytes_accessed=(Mp * Kd + Kd * Nd + Nd + Mp * Nd) * itemsize,
    )

    out2d = pl.pallas_call(
        _linear_probe_kernel,
        out_shape=jax.ShapeDtypeStruct((Mp, Nd), dt),
        grid_spec=pltpu.PrefetchScalarGridSpec(
            num_scalar_prefetch=0,
            grid=(grid,),
            in_specs=[
                pl.BlockSpec((tm_rows, Kd), lambda i: (i, 0)),   # x row tile
                pl.BlockSpec((Kd, Nd), lambda i: (0, 0)),        # full weight
                pl.BlockSpec((1, Nd), lambda i: (0, 0)),         # bias
            ],
            out_specs=pl.BlockSpec((tm_rows, Nd), lambda i: (i, 0)),
        ),
        compiler_params=pltpu.CompilerParams(
            dimension_semantics=("parallel",),   # shards rows across v7x's 2 TCs
            vmem_limit_bytes=vmem_limit,
        ),
        cost_estimate=cost,
    )(x2d, w2d, b2d)

    # (Mp, Nd) is byte-identical to the (M, R) row-major slab when k > 1.
    return out2d.reshape(B, S, R)


def reference_forward(embeddings, weight, bias):
    return (jnp.einsum("bsd,rd->bsr", embeddings, weight,
                       precision=jax.lax.Precision.HIGHEST) + bias)


if __name__ == "__main__":
    key = jax.random.PRNGKey(0)

    def make_case(k, B, S, D, R):
        kx, kw, kb = jax.random.split(k, 3)
        e = jax.random.normal(kx, (B, S, D), dtype=jnp.float32)
        w = jax.random.normal(kw, (R, D), dtype=jnp.float32) * (1.0 / jnp.sqrt(D))
        b = jax.random.normal(kb, (R,), dtype=jnp.float32) * 0.01
        return e, w, b

    k1, k2, k3 = jax.random.split(key, 3)

    # Case 1: module-scale shapes; lane-dense packed path (k=8), single block.
    e1, w1, b1 = make_case(k1, 2, 8, 32, 16)
    o1 = jax.block_until_ready(dependency_probe_forward(e1, w1, b1))
    r1 = reference_forward(e1, w1, b1)
    assert o1.shape == (2, 8, 16)
    assert jnp.allclose(o1, r1, atol=1e-4, rtol=1e-4), "mismatch (packed, tiny)"

    # Case 2: R does not divide 128 -> plain path; ragged multi-step grid.
    e2, w2, b2 = make_case(k2, 4, 100, 64, 24)
    o2 = jax.block_until_ready(dependency_probe_forward(e2, w2, b2, tm=128))
    r2 = reference_forward(e2, w2, b2)
    assert o2.shape == (4, 100, 24)
    assert jnp.allclose(o2, r2, atol=1e-4, rtol=1e-4), "mismatch (plain, ragged)"

    # Case 3: packed path with a ragged last block (Mp = 13, tile = 8, grid = 2).
    e3, w3, b3 = make_case(k3, 2, 52, 32, 16)
    o3 = jax.block_until_ready(dependency_probe_forward(e3, w3, b3))
    r3 = reference_forward(e3, w3, b3)
    assert o3.shape == (2, 52, 16)
    assert jnp.allclose(o3, r3, atol=1e-4, rtol=1e-4), "mismatch (packed, ragged)"

    print("KERNEL_OK")
</pallas_src>

<mosaic_0001>
module attributes {stable_mosaic.version = 11 : i64} {
  func.func @_linear_probe_kernel(%arg0: i32, %arg1: memref<2x256xf32, #tpu.memory_space<vmem>>, %arg2: memref<256x128xf32, #tpu.memory_space<vmem>>, %arg3: memref<1x128xf32, #tpu.memory_space<vmem>>, %arg4: memref<2x128xf32, #tpu.memory_space<vmem>>) attributes {dimension_semantics = [#tpu.dimension_semantics<parallel>], iteration_bounds = array<i64: 1>, scalar_prefetch = 0 : i64, scratch_operands = 0 : i64, tpu.core_type = #tpu.core_type<tc>, window_params = [{transform_indices = @transform_0, window_bounds = array<i64: 2, 256>}, {pipeline_mode = #tpu.pipeline_mode<synchronous>, transform_indices = @transform_1, window_bounds = array<i64: 256, 128>}, {pipeline_mode = #tpu.pipeline_mode<synchronous>, transform_indices = @transform_2, window_bounds = array<i64: 1, 128>}, {transform_indices = @transform_3, window_bounds = array<i64: 2, 128>}]} {
    %c0 = arith.constant 0 : index
    %c0_0 = arith.constant 0 : index
    %0 = vector.load %arg1[%c0, %c0_0] : memref<2x256xf32, #tpu.memory_space<vmem>>, vector<2x256xf32>
    %c0_1 = arith.constant 0 : index
    %c0_2 = arith.constant 0 : index
    %1 = vector.load %arg2[%c0_1, %c0_2] : memref<256x128xf32, #tpu.memory_space<vmem>>, vector<256x128xf32>
    %cst = arith.constant dense<0.000000e+00> : vector<2x128xf32>
    %2 = tpu.matmul %0, %1, %cst {dimension_numbers = #tpu.dot_dimension_numbers<[1], [0], [0], [1], [0, 0, 1, 1], [], []>} : vector<2x256xf32>, vector<256x128xf32>, vector<2x128xf32> -> vector<2x128xf32>
    %c0_3 = arith.constant 0 : index
    %c0_4 = arith.constant 0 : index
    %3 = vector.load %arg3[%c0_3, %c0_4] : memref<1x128xf32, #tpu.memory_space<vmem>>, vector<1x128xf32>
    %4 = vector.broadcast %3 : vector<1x128xf32> to vector<2x128xf32>
    %5 = arith.addf %2, %4 : vector<2x128xf32>
    %c0_5 = arith.constant 0 : index
    %c0_6 = arith.constant 0 : index
    %6 = vector.load %arg4[%c0_5, %c0_6] : memref<2x128xf32, #tpu.memory_space<vmem>>, vector<2x128xf32>
    tpu.vector_store %arg4[%c0_5, %c0_6], %5 {strides = array<i32>} : memref<2x128xf32, #tpu.memory_space<vmem>>, vector<2x128xf32>,
    return
  }
  func.func @transform_0(%arg0: i32) -> (i32, i32) {
    %c0_i32 = arith.constant 0 : i32
    %c0_i32_0 = arith.constant 0 : i32
    return %arg0, %c0_i32 : i32, i32
  }
  func.func @transform_1(%arg0: i32) -> (i32, i32) {
    %c0_i32 = arith.constant 0 : i32
    %c0_i32_0 = arith.constant 0 : i32
    %c0_i32_1 = arith.constant 0 : i32
    return %c0_i32, %c0_i32_0 : i32, i32
  }
  func.func @transform_2(%arg0: i32) -> (i32, i32) {
    %c0_i32 = arith.constant 0 : i32
    %c0_i32_0 = arith.constant 0 : i32
    %c0_i32_1 = arith.constant 0 : i32
    return %c0_i32, %c0_i32_0 : i32, i32
  }
  func.func @transform_3(%arg0: i32) -> (i32, i32) {
    %c0_i32 = arith.constant 0 : i32
    %c0_i32_0 = arith.constant 0 : i32
    return %arg0, %c0_i32 : i32, i32
  }
}

</mosaic_0001>

<bundles_post_ra>
// kernel: dependency_probe_forward.1
= control target key start
LH: loop header
LB: loop body
LE: loop exit
PB: predicated region body
PF: predicated region fallthrough
CT: control target
= control target key end

     0   :  { %s334_s1 = inlined_call_operand.vmem [shape: f32[256,128], index: 1, kind: input, shape index: {}]   ;;  %s335_s0 = inlined_call_operand.vmem [shape: f32[2,256], index: 0, kind: input, shape index: {}]   ;;  %s336_s2 = inlined_call_operand.vmem [shape: f32[1,128], index: 2, kind: input, shape index: {}]   ;;  %s337_s3 = inlined_call_operand.vmem [shape: f32[2,128], index: 3, kind: output, shape index: {}]  }
   0x1   :  { %v31_v0 = vld [vmem:[%s334_s1 + $0x80] sm:$0xff]  ;;  %v32_v1 = vld [vmem:[%s334_s1 + $0x88] sm:$0xff]  ;;  %v33_v5 = vld [vmem:[%s334_s1 + $0x90] sm:$0xff] }
   0x2   :  { %v15_v2 = vld [vmem:[%s334_s1] sm:$0xff]  ;;  %v177_v3 = vpack.c.bf16 %v32_v1, %v31_v0  ;;  %v16_v4 = vld [vmem:[%s334_s1 + $0x8] sm:$0xff]  ;;  %v34_v6 = vld [vmem:[%s334_s1 + $0x98] sm:$0xff] }
   0x3   :  { %v179_v7 = vpack.c.bf16 %v16_v4, %v15_v2  ;;  %v181_v8 = vpack.c.bf16 %v34_v6, %v33_v5  ;;  %v17_v9 = vld [vmem:[%s334_s1 + $0x10] sm:$0xff]  ;;  %v18_v10 = vld [vmem:[%s334_s1 + $0x18] sm:$0xff]  ;;  %v35_v11 = vld [vmem:[%s334_s1 + $0xa0] sm:$0xff] }
   0x4   :  { %178 = vmatprep.subr.bf16.mxu0 %v177_v3  ;;  %v36_v12 = vld [vmem:[%s334_s1 + $0xa8] sm:$0xff]  ;;  %v183_v13 = vpack.c.bf16 %v18_v10, %v17_v9  ;;  %v19_v15 = vld [vmem:[%s334_s1 + $0x20] sm:$0xff]  ;;  %v37_v17 = vld [vmem:[%s334_s1 + $0xb0] sm:$0xff] }
   0x5   :  { %180 = vmatpush3.bf16.msra.mxu0 %v179_v7  ;;  %v185_v14 = vpack.c.bf16 %v36_v12, %v35_v11  ;;  %v20_v16 = vld [vmem:[%s334_s1 + $0x28] sm:$0xff]  ;;  %v38_v18 = vld [vmem:[%s334_s1 + $0xb8] sm:$0xff]  ;;  %v21_v21 = vld [vmem:[%s334_s1 + $0x30] sm:$0xff] }
   0x6   :  { %182 = vmatprep.subr.bf16.mxu0 %v181_v8  ;;  %v187_v19 = vpack.c.bf16 %v20_v16, %v19_v15  ;;  %v189_v20 = vpack.c.bf16 %v38_v18, %v37_v17  ;;  %v22_v22 = vld [vmem:[%s334_s1 + $0x38] sm:$0xff]  ;;  %v39_v23 = vld [vmem:[%s334_s1 + $0xc0] sm:$0xff]  ;;  %v40_v24 = vld [vmem:[%s334_s1 + $0xc8] sm:$0xff] }
   0x7   :  { %v141_v25 = vld.sshfl [vmem:[%s335_s0] sm:$0x33 pattern:$0x76325410]  ;;  %v191_v27 = vpack.c.bf16 %v22_v22, %v21_v21  ;;  %v193_v28 = vpack.c.bf16 %v40_v24, %v39_v23  ;;  %v24_v30 = vld [vmem:[%s334_s1 + $0x48] sm:$0xff]  ;;  %v41_v31 = vld [vmem:[%s334_s1 + $0xd0] sm:$0xff] }
   0x8   :  { %v62_v26 = vcombine.high %v141_v25, %v141_v25  ;;  %v23_v29 = vld [vmem:[%s334_s1 + $0x40] sm:$0xff]  ;;  %v42_v32 = vld [vmem:[%s334_s1 + $0xd8] sm:$0xff]  ;;  %v25_v35 = vld [vmem:[%s334_s1 + $0x50] sm:$0xff] }
   0x9   :  { %184 = vmatpush3.bf16.msra.mxu0 %v183_v13  ;;  %v195_v33 = vpack.c.bf16 %v24_v30, %v23_v29  ;;  %v197_v34 = vpack.c.bf16 %v42_v32, %v41_v31  ;;  %v26_v36 = vld [vmem:[%s334_s1 + $0x58] sm:$0xff]  ;;  %v43_v37 = vld [vmem:[%s334_s1 + $0xe0] sm:$0xff]  ;;  %v44_v38 = vld [vmem:[%s334_s1 + $0xe8] sm:$0xff] }
   0xa   :  { %186 = vmatprep.subr.bf16.mxu0 %v185_v14  ;;  %129 = vmatprep.mubr.f32.mxu0 %v62_v26  ;;  %v199_v39 = vpack.c.bf16 %v26_v36, %v25_v35  ;;  %v201_v40 = vpack.c.bf16 %v44_v38, %v43_v37  ;;  %v27_v41 = vld [vmem:[%s334_s1 + $0x60] sm:$0xff]  ;;  %v28_v42 = vld [vmem:[%s334_s1 + $0x68] sm:$0xff]  ;;  %v45_v43 = vld [vmem:[%s334_s1 + $0xf0] sm:$0xff] }
   0xb   :  { %v46_v44 = vld [vmem:[%s334_s1 + $0xf8] sm:$0xff]  ;;  %v203_v45 = vpack.c.bf16 %v28_v42, %v27_v41  ;;  %v29_v47 = vld [vmem:[%s334_s1 + $0x70] sm:$0xff]  ;;  %v140_v51 = vld [vmem:[%s336_s2] ss:$0 sm:$0xff] }
   0xc   :  { %v205_v46 = vpack.c.bf16 %v46_v44, %v45_v43  ;;  %v30_v48 = vld [vmem:[%s334_s1 + $0x78] sm:$0xff] }
   0xd   :  { %188 = vmatpush3.bf16.msra.mxu0 %v187_v19  ;;  %v207_v49 = vpack.c.bf16 %v30_v48, %v29_v47 }
   0xe   :  { %190 = vmatprep.subr.bf16.mxu0 %v189_v20 }
  0x11   :  { %192 = vmatpush3.bf16.msra.mxu0 %v191_v27 }
  0x12   :  { %194 = vmatprep.subr.bf16.mxu0 %v193_v28 }
  0x15   :  { %196 = vmatpush3.bf16.msra.mxu0 %v195_v33 }
  0x16   :  { %198 = vmatprep.subr.bf16.mxu0 %v197_v34 }
  0x19   :  { %200 = vmatpush3.bf16.msra.mxu0 %v199_v39 }
  0x1a   :  { %202 = vmatprep.subr.bf16.mxu0 %v201_v40 }
  0x1d   :  { %204 = vmatpush3.bf16.msra.mxu0 %v203_v45 }
  0x1e   :  { %206 = vmatprep.subr.bf16.mxu0 %v205_v46 }
  0x21   :  { %208 = vmatpush3.bf16.msra.mxu0 %v207_v49 }
  0x24   :  { %130 = vmatmul.mubr.f32.vlgmr.msra.gmra.mrb[0].mxu0 %v141_v25 }
  0xf7   :  { %v174_v50 = vpop.f32.mrb[0].mxu0 }
  0xf8   :  { %v175_v52 = vpop.f32.mrb[1].mxu0 }
  0xf9   :  { %v176_v53 = vadd.f32 %v175_v52, %v174_v50 }
  0xfb   :  { %v132_v54 = vadd.f32 %v176_v53, %v140_v51 }
  0xfd   :  { %135 = vst [vmem:[%s337_s3] sm:$0x3] %v132_v54 }

</bundles_post_ra>
